<compile_context>
chip_gen: v5e
topology: v5e:2x2
jax: 0.10.0
libtpu: 0.0.40
codegen_flags: <defaults>
</compile_context>

<pallas_src>
import functools

import jax
import jax.numpy as jnp
from jax import lax
from jax.experimental import pallas as pl
from jax.experimental.pallas import tpu as pltpu


def _make_mha_kernel(has_mask: bool, return_scores: bool):
    """Attention-core kernel for grid (B, num_q_tiles, num_heads).

    Per grid step (b, qt, h):
        logits = q_h k_h^T (+ pre-scaled additive mask)
        p      = softmax(logits)            (f32, approx-reciprocal normalize)
        hid[b, qt] += (p @ v_h) @ Wo_h      (heads innermost -> resident f32 acc)
    Q/K/V arrive pre-projected per head, so no work is repeated across query
    tiles and the only weight DMA'd per step is the (dh, D) Wo slice.
    """

    def kernel(*refs):
        i = 0
        q_ref, k_ref, v_ref = refs[0], refs[1], refs[2]
        i = 3
        if has_mask:
            nmask_ref = refs[i]
            i += 1
        wo_ref = refs[i]
        i += 1
        hid_ref = refs[i]
        i += 1
        scores_ref = refs[i] if return_scores else None

        h = pl.program_id(2)

        @pl.when(h == 0)
        def _init():
            hid_ref[...] = jnp.zeros_like(hid_ref)

        # Q K^T contracting the last dim of both operands (no transpose
        # materialized).  1/sqrt(dh) is already folded into q.
        logits = lax.dot_general(q_ref[...], k_ref[...],
                                 (((1,), (1,)), ((), ())),
                                 preferred_element_type=jnp.float32)     # (TQ, Sk)
        if has_mask:
            # nmask = attn_mask * (-1e9 / sqrt(dh)), precomputed once in XLA.
            logits = logits + nmask_ref[...]

        # Numerically stable softmax over keys; reciprocal goes to the EUP slot.
        m = jnp.max(logits, axis=-1, keepdims=True)
        e = jnp.exp(logits - m)
        denom = jnp.sum(e, axis=-1, keepdims=True)
        p = e * pl.reciprocal(denom, approx=True)                        # (TQ, Sk) f32

        if return_scores:
            scores_ref[...] = p.astype(scores_ref.dtype)

        # P @ V in the compute dtype (bf16 halves MXU time), f32 accumulation.
        ctx = jnp.dot(p.astype(v_ref.dtype), v_ref[...],
                      preferred_element_type=jnp.float32)                # (TQ, dh)
        # Summing per-head ctx @ Wo_h into the resident (TQ, D) output block is
        # identical to merge_heads followed by Wo.
        hid_ref[...] += jnp.dot(ctx.astype(wo_ref.dtype), wo_ref[...],
                                preferred_element_type=jnp.float32)

    return kernel


def multi_head_attention(querys, keys, values, attn_mask, wq, wk, wv, wo,
                         num_heads, *, compute_dtype=jnp.float32,
                         scores_dtype=jnp.float32, return_scores=True,
                         q_tile=None):
    """Pallas MHA forward.

    Returns hidden_states [B,Sq,D] (and attn_scores [B,H,Sq,Sk] when
    return_scores=True), matching the PyTorch module semantics.
    Weights are in PyTorch nn.Linear layout [out_features, in_features].
    """
    B, Sq, D = querys.shape
    _, Sk, _ = keys.shape
    assert D % num_heads == 0, "hidden size must be divisible by num_heads"
    dh = D // num_heads
    scale = 1.0 / float(dh) ** 0.5
    cdt = compute_dtype

    # ---- XLA-side prep: one big matmul per projection (nothing recomputed per
    # query tile / head inside the kernel); bf16 cast happens here, never
    # per-step in the kernel (important for v5e which has no bf16 VPU). -------
    def project(x, w, s):
        y = jnp.dot(x.astype(cdt).reshape(B * s, D), w.T.astype(cdt),
                    preferred_element_type=jnp.float32)
        return y.reshape(B, s, num_heads, dh).transpose(0, 2, 1, 3)      # (B,H,s,dh) f32

    q_heads = (project(querys, wq, Sq) * jnp.float32(scale)).astype(cdt)  # scale folded in
    k_heads = project(keys, wk, Sk).astype(cdt)
    v_heads = project(values, wv, Sk).astype(cdt)
    wo_h = wo.T.reshape(num_heads, dh, D).astype(cdt)                     # (H, dh, D)

    has_mask = attn_mask is not None
    if has_mask:
        neg_mask = (attn_mask[:, :, :Sq, :Sk].astype(jnp.float32)
                    * jnp.float32(-1.0e9 * scale))                        # additive, pre-scaled
        mB, mH = neg_mask.shape[0], neg_mask.shape[1]

    # ---- per-chip VMEM-aware tiling -----------------------------------------
    in_b = jnp.dtype(cdt).itemsize
    sc_b = jnp.dtype(scores_dtype).itemsize if return_scores else 0

    def est_vmem(tq):
        blk = (tq * dh + 2 * Sk * dh + dh * D) * in_b + tq * D * 4
        if has_mask:
            blk += tq * Sk * 4
        blk += tq * Sk * sc_b
        # ~2x for double buffering + ~4 (TQ,Sk) f32 temporaries (logits/exp/p).
        return 2 * blk + 4 * tq * Sk * 4

    try:
        vmem_cap = int(pltpu.get_tpu_info().vmem_capacity_bytes)
    except Exception:  # pragma: no cover - conservative fallback
        vmem_cap = 64 * 1024 * 1024
    budget = int(vmem_cap * 0.6)

    if q_tile is None:
        cands = [t for t in (1024, 512, 256, 128, 64, 32, 16, 8)
                 if t <= Sq and Sq % t == 0]
        if not cands or cands[0] != Sq:
            cands = [Sq] + cands          # small / ragged Sq: whole axis is one tile
        q_tile = cands[-1]
        for t in cands:                   # largest tile that fits the VMEM budget
            if est_vmem(t) <= budget:
                q_tile = t
                break
        # v7x has 2 TensorCores: keep >= 2 "parallel" grid steps when B == 1.
        if B == 1 and q_tile == Sq and Sq % 16 == 0:
            q_tile = Sq // 2
    assert Sq % q_tile == 0
    nq = Sq // q_tile

    vmem_limit = int(min(max(est_vmem(q_tile) * 1.5, 32 * 1024 * 1024),
                         vmem_cap * 0.8))

    grid = (B, nq, num_heads)

    in_specs = [
        pl.BlockSpec((None, None, q_tile, dh), lambda b, qt, h: (b, h, qt, 0)),  # q heads
        pl.BlockSpec((None, None, Sk, dh), lambda b, qt, h: (b, h, 0, 0)),       # k heads
        pl.BlockSpec((None, None, Sk, dh), lambda b, qt, h: (b, h, 0, 0)),       # v heads
    ]
    inputs = [q_heads, k_heads, v_heads]
    if has_mask:
        def mask_index(b, qt, h):
            return (b if mB > 1 else 0, h if mH > 1 else 0, qt, 0)
        in_specs.append(pl.BlockSpec((None, None, q_tile, Sk), mask_index))
        inputs.append(neg_mask)
    in_specs.append(pl.BlockSpec((None, dh, D), lambda b, qt, h: (h, 0, 0)))      # Wo slice
    inputs.append(wo_h)

    hid_spec = pl.BlockSpec((None, q_tile, D), lambda b, qt, h: (b, qt, 0))
    hid_shape = jax.ShapeDtypeStruct((B, Sq, D), jnp.float32)   # f32 resident accumulator

    if return_scores:
        out_specs = [hid_spec,
                     pl.BlockSpec((None, None, q_tile, Sk),
                                  lambda b, qt, h: (b, h, qt, 0))]
        out_shape = (hid_shape,
                     jax.ShapeDtypeStruct((B, num_heads, Sq, Sk), scores_dtype))
    else:
        out_specs = [hid_spec]
        out_shape = (hid_shape,)

    grid_spec = pltpu.PrefetchScalarGridSpec(
        num_scalar_prefetch=0,
        grid=grid,
        in_specs=in_specs,
        out_specs=out_specs,
    )

    outs = pl.pallas_call(
        _make_mha_kernel(has_mask, return_scores),
        out_shape=out_shape,
        grid_spec=grid_spec,
        compiler_params=pltpu.CompilerParams(
            dimension_semantics=("parallel", "parallel", "arbitrary"),
            vmem_limit_bytes=vmem_limit,
        ),
    )(*inputs)

    hidden = outs[0].astype(querys.dtype)
    if return_scores:
        return hidden, outs[1]
    return hidden


def reference_mha(querys, keys, values, attn_mask, wq, wk, wv, wo, num_heads):
    B, Sq, D = querys.shape
    Sk = keys.shape[1]
    dh = D // num_heads

    def split(x, s):
        return x.reshape(B, s, num_heads, dh).transpose(0, 2, 1, 3)

    q = split(querys @ wq.T, Sq)
    k = split(keys @ wk.T, Sk)
    v = split(values @ wv.T, Sk)
    logits = jnp.einsum("bhqd,bhkd->bhqk", q, k)
    if attn_mask is not None:
        logits = logits + attn_mask[:, :, :Sq, :Sk] * (-1.0e9)
    scores = jax.nn.softmax(logits / dh ** 0.5, axis=-1)
    ctx = jnp.einsum("bhqk,bhkd->bhqd", scores, v)
    ctx = ctx.transpose(0, 2, 1, 3).reshape(B, Sq, D)
    return ctx @ wo.T, scores


if __name__ == "__main__":
    # Small shapes consistent with the module (d_model divisible by num_heads).
    B, S, D, H = 2, 8, 32, 4

    key = jax.random.PRNGKey(0)
    k_q, k_k, k_v, k_wq, k_wk, k_wv, k_wo = jax.random.split(key, 7)

    querys = jax.random.normal(k_q, (B, S, D), dtype=jnp.float32)
    keys = jax.random.normal(k_k, (B, S, D), dtype=jnp.float32)
    values = jax.random.normal(k_v, (B, S, D), dtype=jnp.float32)

    # PyTorch Linear layout: [out_features, in_features].
    w_scale = 1.0 / (D ** 0.5)
    wq = jax.random.uniform(k_wq, (D, D), jnp.float32, -w_scale, w_scale)
    wk = jax.random.uniform(k_wk, (D, D), jnp.float32, -w_scale, w_scale)
    wv = jax.random.uniform(k_wv, (D, D), jnp.float32, -w_scale, w_scale)
    wo = jax.random.uniform(k_wo, (D, D), jnp.float32, -w_scale, w_scale)

    # Simple padding-style mask: 1.0 where attention should be blocked.
    pad_mask = jnp.zeros((B, 1, S, S), dtype=jnp.float32)
    pad_mask = pad_mask.at[:, :, :, S - 2:].set(1.0)

    ref_hidden, ref_scores = reference_mha(
        querys, keys, values, pad_mask, wq, wk, wv, wo, num_heads=H)

    # f32 compute path (approx EUP reciprocal in the softmax -> slightly
    # loosened tolerance, per the review: loosen the test, keep the opt).
    hidden, attn_scores = multi_head_attention(
        querys, keys, values, pad_mask, wq, wk, wv, wo, num_heads=H,
        compute_dtype=jnp.float32, return_scores=True)
    jax.block_until_ready((hidden, attn_scores))

    assert hidden.shape == (B, S, D)
    assert attn_scores.shape == (B, H, S, S)
    assert jnp.allclose(hidden, ref_hidden, atol=5e-3, rtol=5e-3)
    assert jnp.allclose(attn_scores, ref_scores, atol=5e-3, rtol=5e-3)

    # bf16 compute path (2x MXU throughput, half the DMA bytes); loose tolerance.
    hidden_bf16, scores_bf16 = multi_head_attention(
        querys, keys, values, pad_mask, wq, wk, wv, wo, num_heads=H,
        compute_dtype=jnp.bfloat16, return_scores=True)
    jax.block_until_ready((hidden_bf16, scores_bf16))
    assert jnp.allclose(hidden_bf16, ref_hidden, atol=3e-2, rtol=3e-2)
    assert jnp.allclose(scores_bf16, ref_scores, atol=3e-2, rtol=3e-2)

    # No-scores path: drops the largest HBM write when scores are not consumed.
    hidden_only = multi_head_attention(
        querys, keys, values, pad_mask, wq, wk, wv, wo, num_heads=H,
        compute_dtype=jnp.float32, return_scores=False)
    jax.block_until_ready(hidden_only)
    assert jnp.allclose(hidden_only, ref_hidden, atol=5e-3, rtol=5e-3)

    print("KERNEL_OK")
</pallas_src>

<mosaic_0001>
module attributes {stable_mosaic.version = 11 : i64} {
  func.func @kernel(%arg0: i32, %arg1: i32, %arg2: i32, %arg3: memref<1x1x8x8xf32, #tpu.memory_space<vmem>>, %arg4: memref<1x1x8x8xf32, #tpu.memory_space<vmem>>, %arg5: memref<1x1x8x8xf32, #tpu.memory_space<vmem>>, %arg6: memref<1x1x8x8xf32, #tpu.memory_space<vmem>>, %arg7: memref<1x8x32xf32, #tpu.memory_space<vmem>>, %arg8: memref<1x8x32xf32, #tpu.memory_space<vmem>>, %arg9: memref<1x1x8x8xf32, #tpu.memory_space<vmem>>) attributes {dimension_semantics = [#tpu.dimension_semantics<parallel>, #tpu.dimension_semantics<parallel>, #tpu.dimension_semantics<arbitrary>], iteration_bounds = array<i64: 2, 1, 4>, scalar_prefetch = 0 : i64, scratch_operands = 0 : i64, tpu.core_type = #tpu.core_type<tc>, window_params = [{transform_indices = @transform_0, window_bounds = array<i64: 1, 1, 8, 8>}, {transform_indices = @transform_1, window_bounds = array<i64: 1, 1, 8, 8>}, {transform_indices = @transform_2, window_bounds = array<i64: 1, 1, 8, 8>}, {transform_indices = @transform_3, window_bounds = array<i64: 1, 1, 8, 8>}, {transform_indices = @transform_4, window_bounds = array<i64: 1, 8, 32>}, {transform_indices = @transform_5, window_bounds = array<i64: 1, 8, 32>}, {transform_indices = @transform_6, window_bounds = array<i64: 1, 1, 8, 8>}]} {
    %c0_i32 = arith.constant 0 : i32
    %0 = arith.cmpi eq, %arg2, %c0_i32 : i32
    %1 = arith.extui %0 : i1 to i32
    %c0_i32_0 = arith.constant 0 : i32
    %2 = arith.cmpi ne, %1, %c0_i32_0 : i32
    scf.if %2 {
      %cst_33 = arith.constant 0.000000e+00 : f32
      %36 = vector.broadcast %cst_33 : f32 to vector<8x32xf32>
      %c0_34 = arith.constant 0 : index
      %c0_35 = arith.constant 0 : index
      %c0_36 = arith.constant 0 : index
      %37 = vector.load %arg8[%c0_34, %c0_35, %c0_36] : memref<1x8x32xf32, #tpu.memory_space<vmem>>, vector<1x8x32xf32>
      %38 = vector.shape_cast %37 : vector<1x8x32xf32> to vector<8x32xf32>
      %39 = vector.shape_cast %36 : vector<8x32xf32> to vector<1x8x32xf32>
      tpu.vector_store %arg8[%c0_34, %c0_35, %c0_36], %39 {strides = array<i32>} : memref<1x8x32xf32, #tpu.memory_space<vmem>>, vector<1x8x32xf32>,
    } else {
    }
    %c0 = arith.constant 0 : index
    %c0_1 = arith.constant 0 : index
    %c0_2 = arith.constant 0 : index
    %c0_3 = arith.constant 0 : index
    %3 = vector.load %arg3[%c0, %c0_1, %c0_2, %c0_3] : memref<1x1x8x8xf32, #tpu.memory_space<vmem>>, vector<1x1x8x8xf32>
    %4 = vector.shape_cast %3 : vector<1x1x8x8xf32> to vector<8x8xf32>
    %c0_4 = arith.constant 0 : index
    %c0_5 = arith.constant 0 : index
    %c0_6 = arith.constant 0 : index
    %c0_7 = arith.constant 0 : index
    %5 = vector.load %arg4[%c0_4, %c0_5, %c0_6, %c0_7] : memref<1x1x8x8xf32, #tpu.memory_space<vmem>>, vector<1x1x8x8xf32>
    %6 = vector.shape_cast %5 : vector<1x1x8x8xf32> to vector<8x8xf32>
    %cst = arith.constant dense<0.000000e+00> : vector<8x8xf32>
    %7 = tpu.matmul %4, %6, %cst {dimension_numbers = #tpu.dot_dimension_numbers<[1], [1], [0], [0], [0, 0, 1, 0], [], []>} : vector<8x8xf32>, vector<8x8xf32>, vector<8x8xf32> -> vector<8x8xf32>
    %c0_8 = arith.constant 0 : index
    %c0_9 = arith.constant 0 : index
    %c0_10 = arith.constant 0 : index
    %c0_11 = arith.constant 0 : index
    %8 = vector.load %arg6[%c0_8, %c0_9, %c0_10, %c0_11] : memref<1x1x8x8xf32, #tpu.memory_space<vmem>>, vector<1x1x8x8xf32>
    %9 = vector.shape_cast %8 : vector<1x1x8x8xf32> to vector<8x8xf32>
    %10 = arith.addf %7, %9 : vector<8x8xf32>
    %cst_12 = arith.constant dense<0xFF800000> : vector<8xf32>
    %11 = vector.multi_reduction <maximumf>, %10, %cst_12 [1] : vector<8x8xf32> to vector<8xf32>
    %12 = vector.shape_cast %11 : vector<8xf32> to vector<8x1xf32>
    %13 = vector.broadcast %12 : vector<8x1xf32> to vector<8x8xf32>
    %14 = arith.subf %10, %13 : vector<8x8xf32>
    %15 = math.exp %14 : vector<8x8xf32>
    %cst_13 = arith.constant dense<0.000000e+00> : vector<8xf32>
    %16 = vector.multi_reduction <add>, %15, %cst_13 [1] : vector<8x8xf32> to vector<8xf32>
    %17 = vector.shape_cast %16 : vector<8xf32> to vector<8x1xf32>
    %18 = tpu.reciprocal %17 {approx = true} : vector<8x1xf32> -> vector<8x1xf32>
    %19 = vector.broadcast %18 : vector<8x1xf32> to vector<8x8xf32>
    %20 = arith.mulf %15, %19 : vector<8x8xf32>
    %c0_14 = arith.constant 0 : index
    %c0_15 = arith.constant 0 : index
    %c0_16 = arith.constant 0 : index
    %c0_17 = arith.constant 0 : index
    %21 = vector.load %arg9[%c0_14, %c0_15, %c0_16, %c0_17] : memref<1x1x8x8xf32, #tpu.memory_space<vmem>>, vector<1x1x8x8xf32>
    %22 = vector.shape_cast %21 : vector<1x1x8x8xf32> to vector<8x8xf32>
    %23 = vector.shape_cast %20 : vector<8x8xf32> to vector<1x1x8x8xf32>
    tpu.vector_store %arg9[%c0_14, %c0_15, %c0_16, %c0_17], %23 {strides = array<i32>} : memref<1x1x8x8xf32, #tpu.memory_space<vmem>>, vector<1x1x8x8xf32>,
    %c0_18 = arith.constant 0 : index
    %c0_19 = arith.constant 0 : index
    %c0_20 = arith.constant 0 : index
    %c0_21 = arith.constant 0 : index
    %24 = vector.load %arg5[%c0_18, %c0_19, %c0_20, %c0_21] : memref<1x1x8x8xf32, #tpu.memory_space<vmem>>, vector<1x1x8x8xf32>
    %25 = vector.shape_cast %24 : vector<1x1x8x8xf32> to vector<8x8xf32>
    %cst_22 = arith.constant dense<0.000000e+00> : vector<8x8xf32>
    %26 = tpu.matmul %20, %25, %cst_22 {dimension_numbers = #tpu.dot_dimension_numbers<[1], [0], [0], [1], [0, 0, 1, 1], [], []>} : vector<8x8xf32>, vector<8x8xf32>, vector<8x8xf32> -> vector<8x8xf32>
    %c0_23 = arith.constant 0 : index
    %c0_24 = arith.constant 0 : index
    %c0_25 = arith.constant 0 : index
    %27 = vector.load %arg8[%c0_23, %c0_24, %c0_25] : memref<1x8x32xf32, #tpu.memory_space<vmem>>, vector<1x8x32xf32>
    %28 = vector.shape_cast %27 : vector<1x8x32xf32> to vector<8x32xf32>
    %c0_26 = arith.constant 0 : index
    %c0_27 = arith.constant 0 : index
    %c0_28 = arith.constant 0 : index
    %29 = vector.load %arg7[%c0_26, %c0_27, %c0_28] : memref<1x8x32xf32, #tpu.memory_space<vmem>>, vector<1x8x32xf32>
    %30 = vector.shape_cast %29 : vector<1x8x32xf32> to vector<8x32xf32>
    %cst_29 = arith.constant dense<0.000000e+00> : vector<8x32xf32>
    %31 = tpu.matmul %26, %30, %cst_29 {dimension_numbers = #tpu.dot_dimension_numbers<[1], [0], [0], [1], [0, 0, 1, 1], [], []>} : vector<8x8xf32>, vector<8x32xf32>, vector<8x32xf32> -> vector<8x32xf32>
    %32 = arith.addf %28, %31 : vector<8x32xf32>
    %c0_30 = arith.constant 0 : index
    %c0_31 = arith.constant 0 : index
    %c0_32 = arith.constant 0 : index
    %33 = vector.load %arg8[%c0_30, %c0_31, %c0_32] : memref<1x8x32xf32, #tpu.memory_space<vmem>>, vector<1x8x32xf32>
    %34 = vector.shape_cast %33 : vector<1x8x32xf32> to vector<8x32xf32>
    %35 = vector.shape_cast %32 : vector<8x32xf32> to vector<1x8x32xf32>
    tpu.vector_store %arg8[%c0_30, %c0_31, %c0_32], %35 {strides = array<i32>} : memref<1x8x32xf32, #tpu.memory_space<vmem>>, vector<1x8x32xf32>,
    return
  }
  func.func @transform_0(%arg0: i32, %arg1: i32, %arg2: i32) -> (i32, i32, i32, i32) {
    %c0_i32 = arith.constant 0 : i32
    %c0_i32_0 = arith.constant 0 : i32
    return %arg0, %arg2, %arg1, %c0_i32 : i32, i32, i32, i32
  }
  func.func @transform_1(%arg0: i32, %arg1: i32, %arg2: i32) -> (i32, i32, i32, i32) {
    %c0_i32 = arith.constant 0 : i32
    %c0_i32_0 = arith.constant 0 : i32
    %c0_i32_1 = arith.constant 0 : i32
    return %arg0, %arg2, %c0_i32, %c0_i32_0 : i32, i32, i32, i32
  }
  func.func @transform_2(%arg0: i32, %arg1: i32, %arg2: i32) -> (i32, i32, i32, i32) {
    %c0_i32 = arith.constant 0 : i32
    %c0_i32_0 = arith.constant 0 : i32
    %c0_i32_1 = arith.constant 0 : i32
    return %arg0, %arg2, %c0_i32, %c0_i32_0 : i32, i32, i32, i32
  }
  func.func @transform_3(%arg0: i32, %arg1: i32, %arg2: i32) -> (i32, i32, i32, i32) {
    %c0_i32 = arith.constant 0 : i32
    %c0_i32_0 = arith.constant 0 : i32
    %c0_i32_1 = arith.constant 0 : i32
    return %arg0, %c0_i32, %arg1, %c0_i32_0 : i32, i32, i32, i32
  }
  func.func @transform_4(%arg0: i32, %arg1: i32, %arg2: i32) -> (i32, i32, i32) {
    %c0_i32 = arith.constant 0 : i32
    %c0_i32_0 = arith.constant 0 : i32
    %c0_i32_1 = arith.constant 0 : i32
    return %arg2, %c0_i32, %c0_i32_0 : i32, i32, i32
  }
  func.func @transform_5(%arg0: i32, %arg1: i32, %arg2: i32) -> (i32, i32, i32) {
    %c0_i32 = arith.constant 0 : i32
    %c0_i32_0 = arith.constant 0 : i32
    return %arg0, %arg1, %c0_i32 : i32, i32, i32
  }
  func.func @transform_6(%arg0: i32, %arg1: i32, %arg2: i32) -> (i32, i32, i32, i32) {
    %c0_i32 = arith.constant 0 : i32
    %c0_i32_0 = arith.constant 0 : i32
    return %arg0, %arg2, %arg1, %c0_i32 : i32, i32, i32, i32
  }
}

</mosaic_0001>

<bundles_post_ra>
// kernel: tpu_custom_call.1
= control target key start
LH: loop header
LB: loop body
LE: loop exit
PB: predicated region body
PF: predicated region fallthrough
CT: control target
= control target key end

     0   :  { %s1810_s0 = inlined_call_operand.hbm [shape: f32[2,4,8,8], index: 0, kind: input, shape index: {}]   ;;  %s1811_s1 = inlined_call_operand.hbm [shape: f32[2,4,8,8], index: 1, kind: input, shape index: {}]   ;;  %s1812_s2 = inlined_call_operand.hbm [shape: f32[2,4,8,8], index: 2, kind: input, shape index: {}]   ;;  %s1813_s3 = inlined_call_operand.hbm [shape: f32[2,1,8,8], index: 3, kind: input, shape index: {}]   ;;  %s1814_s4 = inlined_call_operand.hbm [shape: f32[4,8,32], index: 4, kind: input, shape index: {}]   ;;  %s1815_s5 = inlined_call_operand.hbm [shape: f32[2,8,32], index: 5, kind: output, shape index: {0}]   ;;  %s1816_s6 = inlined_call_operand.hbm [shape: f32[2,4,8,8], index: 6, kind: output, shape index: {1}]  }
   0x1   :  { %1841 = sst [smem:[#allocation36_spill]] %s1810_s0 }
   0x2   :  { %1842 = sst [smem:[#allocation37_spill]] %s1811_s1 }
   0x3   :  { %1843 = sst [smem:[#allocation38_spill]] %s1812_s2 }
   0x4   :  { %1844 = sst [smem:[#allocation39_spill]] %s1815_s5 }
   0x5   :  { %1845 = sst [smem:[#allocation40_spill]] %s1816_s6 }
   0x6   :  { %12 = vsyncpa [#allocation3], 0 }
   0x7   :  { %14 = vsyncpa [#allocation3 + $0x1], 0 }
   0x8   :  { %15 = vsyncpa [#allocation6], 0 }
   0x9   :  { %17 = vsyncpa [#allocation6 + $0x1], 0 }
   0xa   :  { %18 = vsyncpa [#allocation9], 0 }
   0xb   :  { %20 = vsyncpa [#allocation9 + $0x1], 0 }
   0xc   :  { %21 = vsyncpa [#allocation4], 0 }
   0xd   :  { %23 = vsyncpa [#allocation4 + $0x1], 0 }
   0xe   :  { %24 = vsyncpa [#allocation13], 0 }
   0xf   :  { %26 = vsyncpa [#allocation13 + $0x1], 0  ;;  %s1398_s21 = smov 0   ;;  %s1400_s22 = smov 0  }
  0x10   :  { %s1402_s23 = smov 0   ;;  %s1404_s24 = smov 0  }
  0x11   :  { %s1406_s25 = smov 0   ;;  %s1408_s26 = smov 0  }
  0x12   :  { %s1410_s27 = smov 0   ;;  %s1412_s28 = smov 0  }
  0x13   :  { %s1414_s29 = smov 0   ;;  %s1416_s30 = smov 0  }
  0x14   :  { %s1418_s7 = smov 0   ;;  %s1420_s8 = smov 0  }
  0x15   :  { %s1422_s9 = smov 0   ;;  %s1424_s10 = smov 0  }
  0x16 LB: > { %1846 = sst [smem:[#allocation20_spill]] %s1320_s24  ;;  %s1469_s11 = sadd.s32 4294967295, %s1360_s10   ;;  %s1360_s10 = sphi %s1424_s10, %s32_s10   ;;  %s1356_s9 = sphi %s1422_s9, %s1916_s9   ;;  %s1352_s8 = sphi %s1420_s8, %s1915_s8   ;;  %s1348_s7 = sphi %s1418_s7, %s1914_s7   ;;  %s1344_s30 = sphi %s1416_s30, %s1913_s30   ;;  %s1340_s29 = sphi %s1414_s29, %s1912_s29   ;;  %s1336_s28 = sphi %s1412_s28, %s1911_s28   ;;  %s1332_s27 = sphi %s1410_s27, %s1904_s27   ;;  %s1328_s26 = sphi %s1408_s26, %s1903_s26   ;;  %s1324_s25 = sphi %s1406_s25, %s1902_s25   ;;  %s1320_s24 = sphi %s1404_s24, %s1901_s24   ;;  %s1316_s23 = sphi %s1402_s23, %s1910_s23   ;;  %s1312_s22 = sphi %s1400_s22, %s1909_s22   ;;  %s1308_s21 = sphi %s1398_s21, %s1908_s21  }
  0x17   : > { %1847 = sst [smem:[#allocation21_spill]] %s1324_s25  ;;  %s828_s12 = sadd.s32 4294967294, %s1360_s10  }
  0x18   : > { %1848 = sst [smem:[#allocation22_spill]] %s1328_s26  ;;  %s44_s13 = sadd.s32 1, %s1352_s8 }
  0x19   : > { %1849 = sst [smem:[#allocation23_spill]] %s1332_s27  ;;  %s51_s14 = sadd.s32 1, %s1356_s9 }
  0x1a   : > { %1850 = sst [smem:[#allocation24_spill]] %s1336_s28  ;;  %p45_p0 = scmp.ge.s32.totalorder %s44_s13, 4 }
  0x1b   : > { %1851 = sst [smem:[#allocation25_spill]] %s1344_s30  ;;  %s62_s15 = sadd.s32 1, %s1340_s29 }
  0x1c   : > { %1852 = sst [smem:[#allocation26_spill]] %s1348_s7  ;;  %p69_p1 = scmp.ne.s32.totalorder %s1340_s29, %s1336_s28 }
  0x1d   : > { %p70_p2 = scmp.eq.s32.totalorder %s1360_s10, 0  ;;  %s1918_s13 = smov (%p45_p0, %s44_s13), 0 }
  0x1e   : > { %1853 = sst [smem:[#allocation27_spill]] %s1918_s13  ;;  %s1920_s14 = smov (!%p45_p0, %s51_s14), %s1356_s9 }
  0x1f   : > { %s1483_s16 = ssub.s32 %s1352_s8, %s1918_s13  ;;  %p1490_p3 = por %p70_p2, %p69_p1 }
  0x20   : > { %p53_p4 = scmp.ge.s32.totalorder %s1920_s14, 2  ;;  %p75_p5 = scmp.ne.s32.totalorder %s1336_s28, %s1332_s27 }
  0x21   : > { %p76_p6 = scmp.eq.s32.totalorder %s1469_s11, 0  ;;  %p1830_p9 = scmp.eq.s32.totalorder %s1469_s11, 7 }
  0x22   : > { %s1922_s14 = smov (%p53_p4, %s1920_s14), 0  ;;  %p1511_p10 = scmp.eq.s32.totalorder %s828_s12, 7 }
  0x23   : > { %1855 = sst [smem:[#allocation28_spill]] %s1922_s14  ;;  %p1502_p8 = por %p76_p6, %p75_p5 }
  0x24   : > { %s1509_s19 = ssub.s32 %s1356_s9, %s1922_s14  ;;  %p1522_p11 = por %p1830_p9, %p69_p1 }
  0x25   : > { %s1856_s18 = scalar_select %p1502_p8, 1, 0 }
  0x26   : > { %s57_s13 = sor.u32 %s1483_s16, %s1509_s19  ;;  %p1528_p13 = por %p1511_p10, %p75_p5 }
  0x27   : > { %1857 = sst [smem:[#allocation29_spill]] %s1856_s18  ;;  %p60_p12 = scmp.eq.s32.totalorder %s57_s13, 0 }
  0x28   : > { %s1859_s27 = scalar_select %p1522_p11, 1, 0 }
  0x29   : > { %s1861_s5 = scalar_select %p1528_p13, 1, 0 }
  0x2a   : > { %1860 = sst [smem:[#allocation30_spill]] %s1859_s27  ;;  %p1829_p0 = scmp.lt.s32.totalorder %s1360_s10, 8 }
  0x2b   : > { %1862 = sst [smem:[#allocation31_spill]] %s1861_s5  ;;  %s1825_s14 = sand.u32 1, %s1340_s29  }
  0x2c   : > { %s1534_s12 = scalar_select %p60_p12, %s1340_s29, %s62_s15  }
  0x2d   : > { %s832_s6 = sshll.u32 %s1356_s9, 2  ;;  %s1540_s7 = sshll.u32 %s1825_s14, 3 }
  0x2e   : > { %1863 = sst [smem:[#allocation32_spill]] %s1534_s12  ;;  %s276_s27 = sadd.s32 %s1352_s8, %s832_s6 }
  0x2f   : > { %s1543_s13 = sshll.u32 %s276_s27, 3  ;;  %p1549_p1 = pnand %p1829_p0, %p1490_p3 }
  0x30   : > { %s1831_s14 = sand.u32 1, %s1360_s10   ;;  %s1865_s1 = sld [smem:[#allocation37_spill]] }
  0x31   : > { %s293_s27 = scalar_lea.vmem [#allocation5], %s1540_s7  ;;  %p844_p3 = scmp.ge.s32.totalorder %s1360_s10, 1 }
  0x32   : > { %s303_s17 = sshll.u32 %s293_s27, 4  ;;  %s1562_s18 = scalar_lea.sflag [#allocation6], %s1831_s14  ;;  %s304_s17 = int_to_ptr.vmem [resolvable:$true] %s303_s17 }
  0x33   : > { %p368_p4 = scmp.lt.s32.totalorder %s1360_s10, 9  ;;  %p144_p12 = scmp.eq.s32.totalorder %s1509_s19, 0 }
  0x34   : > { %s146_s12 = sadd.s32 1, %s1328_s26  ;;  %p153_p7 = scmp.ne.s32.totalorder %s1328_s26, %s1324_s25 }
  0x35   : > { %p1568_p5 = pnand %p844_p3, %p368_p4  ;;  %p159_p0 = scmp.ne.s32.totalorder %s1324_s25, %s1320_s24 }
  0x36   : > { %s299_s6 = scalar_lea.hbm %s1865_s1, %s1543_s13  ;;  %p1583_p9 = por %p153_p7, %p70_p2 }
  0x37   : > { %s301_s30 = sshll.u32 %s299_s6, 4  ;;  %p1589_p3 = por %p159_p0, %p76_p6  ;;  %s302_s30 = int_to_ptr.hbm [resolvable:$true] %s301_s30 }
  0x38   : > { %884 = dma.hbm_to_vmem [thread:$0]  (!%p1549_p1), %s302_s30, 128, %s304_s17, %s1562_s18  }
  0x39   : > { %s1866_s5 = scalar_select %p1568_p5, 1, 0 }
  0x3a   : > { %s1579_s6 = scalar_select %p144_p12, %s1328_s26, %s146_s12  }
  0x3b   : > { %1867 = sst [smem:[#allocation33_spill]] %s1866_s5  ;;  %p1872_p4 = scmp.eq.s32.totalorder %s1469_s11, 7 }
  0x3c   : > { %1868 = sst [smem:[#allocation34_spill]] %s1579_s6  ;;  %p1601_p12 = por %p1511_p10, %p159_p0 }
  0x3d   : > { %s1870_s30 = scalar_select %p1589_p3, 1, 0 }
  0x3e   : > { %p1595_p13 = por %p1872_p4, %p153_p7  ;;  %s333_s12 = sand.u32 1, %s1328_s26  }
  0x3f   : > { %1871 = sst [smem:[#allocation35_spill]] %s1870_s30  ;;  %s840_s14 = sshll.u32 %s333_s12, 3 }
  0x40   : > { %s841_s1 = sshll.u32 %s1356_s9, 3  ;;  %s335_s28 = scalar_lea.vmem [#allocation8], %s840_s14 }
  0x41   : > { %s340_s25 = scalar_lea.hbm %s1813_s3, %s841_s1  ;;  %s344_s5 = sshll.u32 %s335_s28, 4  ;;  %s345_s5 = int_to_ptr.vmem [resolvable:$true] %s344_s5 }
  0x42   : > { %s342_s30 = sshll.u32 %s340_s25, 4  ;;  %p1875_p7 = scmp.lt.s32.totalorder %s1360_s10, 8  ;;  %s343_s30 = int_to_ptr.hbm [resolvable:$true] %s342_s30 }
  0x43   : > { %s1876_s20 = sand.u32 1, %s1360_s10   ;;  %s1877_s0 = sld [smem:[#allocation36_spill]] }
  0x44   : > { %p888_p10 = pnand %p1875_p7, %p1583_p9  ;;  %s1616_s26 = scalar_lea.sflag [#allocation9], %s1876_s20 }
  0x45   : > { %s271_s28 = scalar_lea.vmem [#allocation2], %s1540_s7  ;;  %s1878_s27 = sand.u32 1, %s1340_s29  }
  0x46   : > { %890 = dma.hbm_to_vmem [thread:$0]  (!%p888_p10), %s343_s30, 128, %s345_s5, %s1616_s26  }
  0x47   : > { %s282_s14 = sshll.u32 %s271_s28, 4  ;;  %s268_s5 = scalar_lea.sflag [#allocation3], %s1878_s27  ;;  %s283_s14 = int_to_ptr.vmem [resolvable:$true] %s282_s14 }
  0x48   : > { %s1879_s2 = sld [smem:[#allocation38_spill]]  ;;  %s314_s24 = scalar_lea.vmem [#allocation7], %s1540_s7 }
  0x49   : > { %s278_s25 = scalar_lea.hbm %s1877_s0, %s1543_s13  ;;  %s324_s1 = sshll.u32 %s314_s24, 4  ;;  %s325_s1 = int_to_ptr.vmem [resolvable:$true] %s324_s1 }
  0x4a   : > { %s280_s6 = sshll.u32 %s278_s25, 4  ;;  %s172_s25 = sadd.s32 1, %s1316_s23  ;;  %s281_s6 = int_to_ptr.hbm [resolvable:$true] %s280_s6 }
  0x4b   : > { %881 = dma.hbm_to_vmem [thread:$0]  (!%p1549_p1), %s281_s6, 128, %s283_s14, %s268_s5  }
  0x4c   : > { %p1880_p9 = scmp.eq.s32.totalorder %s1483_s16, 0  ;;  %p179_p0 = scmp.ne.s32.totalorder %s1316_s23, %s1312_s22 }
  0x4d   : > { %p185_p4 = scmp.ne.s32.totalorder %s1312_s22, %s1308_s21  ;;  %s353_s14 = sand.u32 1, %s1316_s23  }
  0x4e   : > { %s320_s20 = scalar_lea.hbm %s1879_s2, %s1543_s13  ;;  %s843_s6 = sshll.u32 %s1352_s8, 3 }
  0x4f   : > { %s322_s28 = sshll.u32 %s320_s20, 4  ;;  %p181_p7 = por %p179_p0, %p70_p2  ;;  %s323_s28 = int_to_ptr.hbm [resolvable:$true] %s322_s28 }
  0x50   : > { %887 = dma.hbm_to_vmem [thread:$0]  (!%p1549_p1), %s323_s28, 128, %s325_s1, %s1562_s18  }
  0x51   : > { %s1640_s0 = scalar_select %p1880_p9, %s1316_s23, %s172_s25  }
  0x52   : > { %p1652_p10 = por %p185_p4, %p76_p6  ;;  %s842_s13 = sshll.u32 %s353_s14, 3 }
  0x53   : > { %s359_s27 = scalar_lea.hbm %s1814_s4, %s843_s6  ;;  %s355_s5 = scalar_lea.vmem [#allocation10], %s842_s13 }
  0x54   : > { %s361_s16 = sshll.u32 %s359_s27, 4  ;;  %s363_s30 = sshll.u32 %s355_s5, 4  ;;  %s362_s16 = int_to_ptr.hbm [resolvable:$true] %s361_s16  ;;  %s364_s30 = int_to_ptr.vmem [resolvable:$true] %s363_s30 }
  0x55   : > { %p1882_p1 = scmp.lt.s32.totalorder %s1360_s10, 8  ;;  %372 = sbr.rel (%p1568_p5) target bundleno = 778 (0x30a), region = 40 }
  0x56   : > { %s1884_s12 = sld [smem:[#allocation24_spill]] (!%p1568_p5) }
  0x57   : > { %p891_p9 = pnand %p1882_p1, %p181_p7 }
  0x59   : > { %893 = dma.hbm_to_vmem [thread:$0]  (!%p891_p9), %s362_s16, 128, %s364_s30, %s1616_s26  }
  0x5c   : > { %s1665_s24 = sand.u32 1, %s1884_s12  }
  0x5d   : > { %s1668_s1 = sshll.u32 %s1665_s24, 3  ;;  %s375_s28 = scalar_lea.sflag [#allocation3], %s1665_s24 }
  0x5e   : > { %s378_s25 = scalar_lea.vmem [#allocation2], %s1668_s1 }
  0x5f   : > { %1283 = dma.done.wait (%p1502_p8), %s375_s28, 128  }
  0x60   : > { %1285 = vsyncadd (%p1502_p8), %s375_s28, 4294967168  ;;  %s384_s26 = sand.u32 1, %s1469_s11   ;;  %s388_s6 = scalar_lea.vmem [#allocation5], %s1668_s1 }
  0x61   : > { %s385_s14 = scalar_lea.sflag [#allocation6], %s384_s26 }
  0x62   : > { %1287 = dma.done.wait (%p1502_p8), %s385_s14, 256  }
  0x63   : > { %1289 = vsyncadd (%p1502_p8), %s385_s14, 4294967040  ;;  %s1886_s13 = sld [smem:[#allocation21_spill]]  ;;  %s398_s16 = scalar_lea.vmem [#allocation7], %s1668_s1 }
  0x64   : > { %s405_s5 = scalar_lea.sflag [#allocation9], %s384_s26 }
  0x69   : > { %s1840_s18 = sand.u32 1, %s1886_s13  }
  0x6a   : > { %s848_s27 = sshll.u32 %s1840_s18, 3 }
  0x6b   : > { %s408_s30 = scalar_lea.vmem [#allocation8], %s848_s27 }
  0x6c   : > { %1291 = dma.done.wait (%p1589_p3), %s405_s5, 128  }
  0x6d   : > { %1293 = vsyncadd (%p1589_p3), %s405_s5, 4294967168  ;;  %s416_s11 = sand.u32 1, %s1312_s22  }
  0x6e   : > { %s1691_s21 = sshll.u32 %s416_s11, 3 }
  0x6f   : > { %s418_s12 = scalar_lea.vmem [#allocation10], %s1691_s21 }
  0x70   : > { %1295 = dma.done.wait (%p1652_p10), %s405_s5, 128  }
  0x71   : > { %1297 = vsyncadd (%p1652_p10), %s405_s5, 4294967168  ;;  %s1698_s20 = scalar_lea.vmem [#allocation11], %s848_s27  ;;  %s472_s28 = scalar_lea.vmem [#allocation12], %s1668_s1 }
  0x72   : > { %s1888_s26 = sld [smem:[#allocation25_spill]] }
  0x78   : > { %p852_p2 = scmp.ne.s32.totalorder %s1888_s26, 0 }
  0x7a   : > { %476 = sbr.rel (%p852_p2) target bundleno = 129 (0x81), region = 64 }
  0x7f   : > { %vm477_vm0 = vcmask 261120   ;;  %v1362_v0 = vmov 0.0  }
  0x80   : > { %478 = vst.msk [vmem:[%s1698_s20] sm:$0xff] %vm477_vm0, %v1362_v0 }
  0x81 PF: > { %v480_v1 = vld [vmem:[%s388_s6] sm:$0xff]  ;;  %vm482_vm1 = vcmask 64512   ;;  %v479_v2 = vld [vmem:[%s378_s25] sm:$0xff]  ;;  %s1889_s7 = sld [smem:[#allocation26_spill]]  ;;  %s609_s11 = sshll.u32 %s472_s28, 4  ;;  %s610_s11 = int_to_ptr.vmem [resolvable:$true] %s609_s11 }
  0x82   : > { %853 = vmatpush.xpose.msk.msra.mxu0 %vm482_vm1, %v480_v1  ;;  %v481_v3 = vld [vmem:[%s408_s30] sm:$0xff]  ;;  %s1890_s14 = sld [smem:[#allocation25_spill]]  ;;  %v521_v12 = vld [vmem:[%s398_s16] sm:$0xff]  ;;  %s579_s18 = scalar_lea.sflag [#allocation13], %s1665_s24 }
  0x83   : > { %540 = vmatpush.msra.mxu1 %v521_v12  ;;  %v546_v16 = vld [vmem:[%s418_s12] sm:$0xff]  ;;  %s1892_s5 = sld [smem:[#allocation40_spill]] }
  0x84   : > { %565 = vmatpush.msra.mxu2 %v546_v16 }
  0x85   : > { %854 = vmatmul.msk.f32.vlgmr.msra.gmra.mxu0 %vm482_vm1, %v479_v2 }
  0x87   : > { %s860_s6 = sshll.u32 %s1889_s7, 2 }
  0x88   : > { %s605_s13 = sadd.s32 %s1890_s14, %s860_s6 }
  0x89   : > { %s861_s15 = sshll.u32 %s605_s13, 3  ;;  %s1190_s6 = scalar_lea.hbm %s1892_s5, 64 }
  0x8a   : > { %s607_s30 = scalar_lea.hbm %s1892_s5, %s861_s15 }
  0x8b   : > { %s611_s26 = sshll.u32 %s607_s30, 4  ;;  %s612_s26 = int_to_ptr.hbm [resolvable:$true] %s611_s26 }
  0x8c   : > { %s1184_s21 = sshra.s32 %s612_s26, 4  ;;  %s1185_s21 = int_to_ptr.hbm [resolvable:$true] %s1184_s21 }
  0x8d   : > { %s1186_s12 = scalar_lea.hbm %s1185_s21, 8  ;;  %p1191_p3 = scmp.lt.s32.totalorder %s1185_s21, %s1892_s5 }
  0x8e   : > { %p1187_p6 = scmp.ne.s32.totalorder %s1185_s21, %s1186_s12  ;;  %p1192_p0 = scmp.lt.s32.totalorder %s1190_s6, %s1186_s12 }
  0x90   : > { %p1188_p8 = pnand %p1187_p6, %p1522_p11  ;;  %p1193_p4 = por %p1192_p0, %p1191_p3 }
  0x92   : > { %p1189_p5 = pneg %p1188_p8 }
  0x94   : > { %p1194_p7 = pnand %p1193_p4, %p1189_p5 }
 0x102   : > { %v506_v4 = vpop.f32.mrf.mxu0 }
 0x103   : > { %v507_v5 = vadd.f32 %v506_v4, %v481_v3 }
 0x105   : > { %v509_v6 = vsel %vm482_vm1, %v507_v5, -inf }
 0x106   : > { %510 = vmax.xlane.f32.xlu0 %v509_v6 }
 0x179   : > { %v511_v7 = vpop.xlane.xlu0 %510 }
 0x17a   : > { %v512_v8 = vsub.f32 %v507_v5, %v511_v7 }
 0x17c   : > { %v513_v9 = vmul.f32 1.442695, %v512_v8 }
 0x17e   : > { %1016 = vpow2.f32 %v513_v9 }
 0x184   : > { %v1017_v10 = vpop.eup %1016 }
 0x185   : > { %v515_v11 = vsel %vm482_vm1, %v1017_v10, 0.0 }
 0x186   : > { %516 = vadd.xlane.f32.xlu0 %v515_v11 }
 0x1f9   : > { %v517_v13 = vpop.xlane.xlu0 %516 }
 0x1fa   : > { %1018 = vrcp.f32 %v517_v13 }
 0x200   : > { %v1019_v14 = vpop.eup %1018 }
 0x201   : > { %v519_v15 = vmul.f32 %v1019_v14, %v1017_v10 }
 0x203   : > { %855 = vmatmul.msk.f32.vlgmr.msra.gmra.mxu1 %vm482_vm1, %v519_v15  ;;  %520 = vst.msk [vmem:[%s472_s28] sm:$0xff] %vm482_vm1, %v519_v15 }
 0x280   : > { %v542_v17 = vpop.f32.mrf.mxu1 }
 0x281   : > { %856 = vmatmul.msk.f32.vlgmr.msra.gmra.mxu2 %vm482_vm1, %v542_v17 }
 0x282   : > { %1197 = shalt.err (!%p1194_p7)
}
 0x283   : > { %s1893_s24 = sld [smem:[#allocation21_spill]]  ;;  %s859_s1 = sshll.u32 %s1889_s7, 3  ;;  %v545_v18 = vld [vmem:[%s1698_s20] sm:$0xff]  ;;  %vm571_vm2 = vcmask 261120  }
 0x284   : > { %875 = dma.vmem_to_hbm [thread:$0]  (%p1522_p11), %s610_s11, 128, %s612_s26, %s579_s18  }
 0x285   : > { %s1894_s15 = sld [smem:[#allocation39_spill]]  ;;  %s592_s30 = sshll.u32 %s1698_s20, 4  ;;  %s593_s30 = int_to_ptr.vmem [resolvable:$true] %s592_s30 }
 0x289   : > { %s1895_s25 = sand.u32 1, %s1893_s24  }
 0x28a   : > { %s574_s12 = scalar_lea.sflag [#allocation4], %s1895_s25 }
 0x28b   : > { %s590_s16 = scalar_lea.hbm %s1894_s15, %s859_s1  ;;  %s1218_s26 = scalar_lea.hbm %s1894_s15, 16 }
 0x28c   : > { %s594_s21 = sshll.u32 %s590_s16, 4  ;;  %s595_s21 = int_to_ptr.hbm [resolvable:$true] %s594_s21 }
 0x28d   : > { %s1212_s14 = sshra.s32 %s595_s21, 4  ;;  %s1213_s14 = int_to_ptr.hbm [resolvable:$true] %s1212_s14 }
 0x28e   : > { %s1214_s18 = scalar_lea.hbm %s1213_s14, 8  ;;  %p1219_p9 = scmp.lt.s32.totalorder %s1213_s14, %s1894_s15 }
 0x28f   : > { %p1215_p11 = scmp.ne.s32.totalorder %s1213_s14, %s1214_s18  ;;  %p1220_p2 = scmp.lt.s32.totalorder %s1218_s26, %s1214_s18 }
 0x291   : > { %p1216_p10 = pnand %p1215_p11, %p1595_p13  ;;  %p1221_p6 = por %p1220_p2, %p1219_p9 }
 0x293   : > { %p1217_p1 = pneg %p1216_p10 }
 0x295   : > { %p1222_p8 = pnand %p1221_p6, %p1217_p1 }
 0x304   : > { %v567_v19 = vpop.f32.mrf.mxu2 }
 0x305   : > { %v570_v20 = vadd.f32 %v567_v19, %v545_v18 }
 0x307   : > { %572 = vst.msk [vmem:[%s1698_s20] sm:$0xff] %vm571_vm2, %v570_v20 }
 0x308   : > { %1225 = shalt.err (!%p1222_p8)
}
 0x309   : > { %874 = dma.vmem_to_hbm [thread:$0]  (%p1595_p13), %s593_s30, 128, %s595_s21, %s574_s12  }
 0x30a PF: > { %s1896_s20 = sld [smem:[#allocation20_spill]]  ;;  %p902_p5 = scmp.ge.s32.totalorder %s1360_s10, 2 }
 0x30c   : > { %p895_p3 = pnand %p902_p5, %p1601_p12 }
 0x30e   : > { %p896_p0 = pneg %p895_p3 }
 0x310   : > { %s623_s27 = sand.u32 1, %s1896_s20  }
 0x311   : > { %s624_s24 = scalar_lea.sflag [#allocation4], %s623_s27 }
 0x312   : > { %1299 = dma.done.wait (%p896_p0), %s624_s24, 128  }
 0x313   : > { %1301 = vsyncadd (%p896_p0), %s624_s24, 4294967168  ;;  %s1897_s1 = sld [smem:[#allocation23_spill]] }
 0x314   : > { %s1898_s28 = sld [smem:[#allocation31_spill]] }
 0x319   : > { %s633_s2 = sand.u32 1, %s1897_s1  }
 0x31a   : > { %p1899_p4 = scmp.ne.s32.totalorder %s1898_s28, 0  ;;  %s634_s19 = scalar_lea.sflag [#allocation13], %s633_s2 }
 0x31c   : > { %p898_p7 = pnand %p902_p5, %p1899_p4 }
 0x31e   : > { %p899_p11 = pneg %p898_p7 }
 0x320   : > { %1303 = dma.done.wait (%p899_p11), %s634_s19, 128  }
 0x321   : > { %1305 = vsyncadd (%p899_p11), %s634_s19, 4294967168  ;;  %s32_s10 = sadd.s32 1, %s1360_s10   ;;  %s1901_s24 = sld [smem:[#allocation21_spill]] }
 0x322   : > { %p1763_p13 = scmp.ge.s32.totalorder %s32_s10, 10   ;;  %s1902_s25 = sld [smem:[#allocation22_spill]] }
 0x323   : > { %s1903_s26 = sld [smem:[#allocation34_spill]]  ;;  %s1908_s21 = smov %s1312_s22 }
 0x324   : > { %s1904_s27 = sld [smem:[#allocation24_spill]]  ;;  %s1909_s22 = smov %s1316_s23 }
 0x325   : > { %s1905_s17 = sld [smem:[#allocation32_spill]]  ;;  %s1910_s23 = smov %s1640_s0 }
 0x326   : > { %s1906_s12 = sld [smem:[#allocation27_spill]]  ;;  %s1911_s28 = smov %s1340_s29 }
 0x327   : > { %s1907_s14 = sld [smem:[#allocation28_spill]]  ;;  %s1913_s30 = smov %s1352_s8 }
 0x328   : > { %s1914_s7 = smov %s1356_s9 }
 0x329   :  { %31 = sbr.rel (!%p1763_p13) target bundleno = 22 (0x16), region = 154 }
 0x32b   : > { %s1912_s29 = smov %s1905_s17 }
 0x32c   : > { %s1915_s8 = smov %s1906_s12 }
 0x32d   : > { %s1916_s9 = smov %s1907_s14 }
 0x32e   :  { %640 = vsyncpa [#allocation3], 1 }
 0x32f   :  { %642 = vsyncpa [#allocation3 + $0x1], 1 }
 0x330   :  { %643 = vsyncpa [#allocation6], 1 }
 0x331   :  { %645 = vsyncpa [#allocation6 + $0x1], 1 }
 0x332   :  { %646 = vsyncpa [#allocation9], 1 }
 0x333   :  { %648 = vsyncpa [#allocation9 + $0x1], 1 }
 0x334   :  { %649 = vsyncpa [#allocation4], 1 }
 0x335   :  { %651 = vsyncpa [#allocation4 + $0x1], 1 }
 0x336   :  { %652 = vsyncpa [#allocation13], 1 }
 0x337   :  { %654 = vsyncpa [#allocation13 + $0x1], 1 }

</bundles_post_ra>
